<compile_context>
chip_gen: v5e
topology: v5e:2x2
jax: 0.10.0
libtpu: 0.0.40
codegen_flags: <defaults>
</compile_context>

<pallas_src>
import math

import jax
import jax.numpy as jnp
from jax.experimental import pallas as pl
from jax.experimental.pallas import tpu as pltpu


def _round_up(x, m):
    return ((x + m - 1) // m) * m


def _vmem_limit(need_bytes):
    # Floor at 32 MiB (v5e's scoped default is only 16 MiB); cap at 48 MiB so
    # the request stays comfortably inside v7x's 64 MiB physical VMEM.
    return int(min(max(need_bytes + (8 << 20), 32 << 20), 48 << 20))


# --------------------- fused path (small graphs, one call) --------------------
def _make_fused_kernel(has_bias):
    def kernel(x_ref, w_ref, adj_ref, *rest):
        if has_bias:
            b_ref, out_ref = rest
        else:
            (out_ref,) = rest
        sup = jnp.dot(x_ref[...], w_ref[...], preferred_element_type=jnp.float32)
        out = jnp.dot(adj_ref[...], sup, preferred_element_type=jnp.float32)
        if has_bias:
            out = out + b_ref[...]
        out_ref[...] = out.astype(out_ref.dtype)
    return kernel


# ------------------------- stage 1: support = X @ W ---------------------------
def _support_kernel(x_ref, w_ref, out_ref):
    out_ref[...] = jnp.dot(
        x_ref[...], w_ref[...], preferred_element_type=jnp.float32
    ).astype(out_ref.dtype)


# --------------------- stage 2: out = adj @ support + bias --------------------
def _make_aggregate_kernel(*, tk, n_cols, support_resident, has_bias, mask_cols):
    def kernel(adj_ref, sup_ref, *rest):
        if has_bias:
            b_ref, out_ref = rest
        else:
            (out_ref,) = rest
        k = pl.program_id(1)

        @pl.when(k == 0)
        def _():
            out_ref[...] = jnp.zeros_like(out_ref)

        adj_blk = adj_ref[...]
        if mask_cols:
            # adj is streamed unpadded: the part of the last column tile beyond
            # n holds unspecified data -> zero it (support pad rows are exact 0,
            # but garbage * 0 could still be NaN, so the mask is mandatory).
            col = jax.lax.broadcasted_iota(jnp.int32, adj_blk.shape, 1)
            adj_blk = jnp.where(col < (n_cols - k * tk), adj_blk, 0.0)

        if support_resident:
            start = pl.multiple_of(k * tk, tk)
            sup_blk = sup_ref[pl.ds(start, tk), :]
        else:
            sup_blk = sup_ref[...]

        # f32 accumulation directly into the resident output block.
        out_ref[...] += jnp.dot(adj_blk, sup_blk, preferred_element_type=jnp.float32)

        if has_bias:
            @pl.when(k == pl.num_programs(1) - 1)
            def _():
                out_ref[...] += b_ref[...]
    return kernel


def graph_convolution(x, adj, weight, bias=None):
    """Pallas GCN forward: out = adj @ (x @ weight) (+ bias).

    x: (N, F_in), adj: (N, N) dense, weight: (F_in, F_out), bias: (F_out,)|None.
    Returns (N, F_out) in x.dtype.
    """
    n, f_in = x.shape
    assert weight.shape[0] == f_in
    assert adj.shape == (n, n)
    f_out = weight.shape[1]
    out_dtype = x.dtype
    has_bias = bias is not None
    f32 = jnp.float32

    # All math in f32 (matches the torch FloatTensor module). astype is a no-op
    # for f32 inputs, so no extra HBM traffic is paid for adj.
    x = x.astype(f32)
    adj = adj.astype(f32)
    weight = weight.astype(f32)

    f_in_pad = _round_up(f_in, 128)
    f_out_pad = _round_up(f_out, 128)   # lane-dense stores / aligned support

    # Weight / bias padding is tiny and keeps all MXU shapes lane-aligned.
    w_p = jnp.zeros((f_in_pad, f_out_pad), f32).at[:f_in, :f_out].set(weight)
    b_p = None
    if has_bias:
        b_p = jnp.zeros((1, f_out_pad), f32).at[0, :f_out].set(bias.astype(f32))

    # ----------------------- fused single-call path (small n) -----------------
    n_p = _round_up(n, 128)
    fused_need = 2 * 4 * (n_p * f_in_pad + f_in_pad * f_out_pad
                          + n_p * n_p + n_p * f_out_pad + f_out_pad)
    if n <= 1024 and fused_need <= (36 << 20):
        x_p = jnp.zeros((n_p, f_in_pad), f32).at[:n, :f_in].set(x)
        adj_p = jnp.zeros((n_p, n_p), f32).at[:n, :n].set(adj)
        in_specs = [
            pl.BlockSpec((n_p, f_in_pad), lambda i: (0, 0)),
            pl.BlockSpec((f_in_pad, f_out_pad), lambda i: (0, 0)),
            pl.BlockSpec((n_p, n_p), lambda i: (0, 0)),
        ]
        args = [x_p, w_p, adj_p]
        if has_bias:
            in_specs.append(pl.BlockSpec((1, f_out_pad), lambda i: (0, 0)))
            args.append(b_p)
        out_p = pl.pallas_call(
            _make_fused_kernel(has_bias),
            out_shape=jax.ShapeDtypeStruct((n_p, f_out_pad), f32),
            grid_spec=pltpu.PrefetchScalarGridSpec(
                num_scalar_prefetch=0,
                grid=(1,),
                in_specs=in_specs,
                out_specs=pl.BlockSpec((n_p, f_out_pad), lambda i: (0, 0)),
            ),
            compiler_params=pltpu.CompilerParams(
                dimension_semantics=("arbitrary",),
                vmem_limit_bytes=_vmem_limit(fused_need),
            ),
        )(*args)
        return out_p[:n, :f_out].astype(out_dtype)

    # ----------------------------- two-stage path -----------------------------
    # Stage-2 tiles: big tiles amortize per-grid-step overhead (~0.35 us/step).
    # tm=512 keeps >=2 row tiles here (n > 1024 on this path), so the "parallel"
    # row axis still splits across v7x's two TensorCores.
    tm = 512
    base_cols = _round_up(n, 512)
    tk = 512
    for cand in (2048, 1024):
        streamed_need = (3 * tm * cand + 2 * cand * f_out_pad
                         + 2 * tm * f_out_pad) * 4
        # Pick the largest tk that adds no column padding beyond the 512 grain
        # and keeps the streamed working set inside the VMEM budget.
        if _round_up(n, cand) == base_cols and streamed_need <= (36 << 20):
            tk = cand
            break
    n_cols_pad = _round_up(n, tk)   # == base_cols by construction
    n_rows_pad = _round_up(n, tm)   # rows / cols padded independently

    # ---- stage 1: support = X @ W (computed exactly once, f32) ---------------
    # x is padded (cheap: n*f_in << n*n bytes) so support pad rows are exact 0.
    tm1 = 512
    while tm1 > 128 and 2 * tm1 * f_in_pad * 4 > (16 << 20):
        tm1 //= 2
    # TODO(synk): a very large f_in would additionally want an f_in-reduction
    #             grid axis in stage 1; full-f_in blocks cover typical GCN sizes.
    x_p = jnp.zeros((n_cols_pad, f_in_pad), f32).at[:n, :f_in].set(x)
    need1 = (2 * tm1 * f_in_pad + 2 * f_in_pad * f_out_pad
             + 2 * tm1 * f_out_pad) * 4
    support = pl.pallas_call(
        _support_kernel,
        out_shape=jax.ShapeDtypeStruct((n_cols_pad, f_out_pad), f32),
        grid_spec=pltpu.PrefetchScalarGridSpec(
            num_scalar_prefetch=0,
            grid=(n_cols_pad // tm1,),
            in_specs=[
                pl.BlockSpec((tm1, f_in_pad), lambda i: (i, 0)),
                pl.BlockSpec((f_in_pad, f_out_pad), lambda i: (0, 0)),
            ],
            out_specs=pl.BlockSpec((tm1, f_out_pad), lambda i: (i, 0)),
        ),
        compiler_params=pltpu.CompilerParams(
            dimension_semantics=("parallel",),
            vmem_limit_bytes=_vmem_limit(need1),
        ),
    )(x_p, w_p)

    # ---- stage 2: out = adj @ support (+ bias) --------------------------------
    # adj streamed in native f32, unpadded (biggest HBM saving); support kept
    # fully VMEM-resident when it fits, else streamed per reduction tile.
    adj_blk_bytes = tm * tk * 4
    sup_bytes = n_cols_pad * f_out_pad * 4
    out_blk_bytes = tm * f_out_pad * 4
    need_resident = 3 * adj_blk_bytes + 2 * sup_bytes + 2 * out_blk_bytes
    support_resident = need_resident <= (36 << 20)
    if support_resident:
        sup_spec = pl.BlockSpec((n_cols_pad, f_out_pad), lambda i, k: (0, 0))
        need2 = need_resident
    else:
        sup_spec = pl.BlockSpec((tk, f_out_pad), lambda i, k: (k, 0))
        need2 = 3 * adj_blk_bytes + 2 * tk * f_out_pad * 4 + 2 * out_blk_bytes

    in_specs = [
        # adj stream: dominant HBM traffic -> triple-buffer the big tiles.
        pl.BlockSpec((tm, tk), lambda i, k: (i, k), pipeline_mode=pl.Buffered(3)),
        sup_spec,
    ]
    args = [adj, support]
    if has_bias:
        in_specs.append(pl.BlockSpec((1, f_out_pad), lambda i, k: (0, 0)))
        args.append(b_p)

    kernel = _make_aggregate_kernel(
        tk=tk, n_cols=n, support_resident=support_resident,
        has_bias=has_bias, mask_cols=(n % tk != 0))

    out_p = pl.pallas_call(
        kernel,
        out_shape=jax.ShapeDtypeStruct((n_rows_pad, f_out_pad), f32),
        grid_spec=pltpu.PrefetchScalarGridSpec(
            num_scalar_prefetch=0,
            grid=(n_rows_pad // tm, n_cols_pad // tk),
            in_specs=in_specs,
            out_specs=pl.BlockSpec((tm, f_out_pad), lambda i, k: (i, 0)),
        ),
        compiler_params=pltpu.CompilerParams(
            dimension_semantics=("parallel", "arbitrary"),
            vmem_limit_bytes=_vmem_limit(need2),
        ),
    )(*args)

    return out_p[:n, :f_out].astype(out_dtype)


if __name__ == "__main__":
    def make_case(key, n, f_in, f_out):
        k_x, k_adj, k_w, k_b = jax.random.split(key, 4)
        # Parameter init mirroring reset_parameters(): uniform(-stdv, stdv),
        # stdv = 1/sqrt(out_features).
        stdv = 1.0 / math.sqrt(f_out)
        weight = jax.random.uniform(k_w, (f_in, f_out), jnp.float32,
                                    minval=-stdv, maxval=stdv)
        bias = jax.random.uniform(k_b, (f_out,), jnp.float32,
                                  minval=-stdv, maxval=stdv)
        x = jax.random.uniform(k_x, (n, f_in), jnp.float32)
        a = (jax.random.uniform(k_adj, (n, n), jnp.float32) > 0.5).astype(jnp.float32)
        a = a + jnp.eye(n, dtype=jnp.float32)                 # self-loops
        adj = a / jnp.sum(a, axis=1, keepdims=True)           # row-normalize
        return x, adj, weight, bias

    key_small, key_big = jax.random.split(jax.random.PRNGKey(0))

    # Small case (N=16, 32 -> 64): exercises the single fused kernel (+ no-bias).
    x, adj, w, b = make_case(key_small, 16, 32, 64)
    out = graph_convolution(x, adj, w, b)
    jax.block_until_ready(out)
    ref = adj @ (x @ w) + b
    assert out.shape == (16, 64) and out.dtype == x.dtype
    assert jnp.allclose(out, ref, atol=2e-2, rtol=2e-2), \
        float(jnp.max(jnp.abs(out - ref)))

    out_nb = graph_convolution(x, adj, w, None)
    jax.block_until_ready(out_nb)
    assert jnp.allclose(out_nb, adj @ (x @ w), atol=2e-2, rtol=2e-2)

    # Larger, non-aligned case (N=1200, 64 -> 96): exercises the two-stage path
    # (native-f32 unpadded adj stream + in-kernel edge mask, resident support).
    xb, adjb, wb, bb = make_case(key_big, 1200, 64, 96)
    outb = graph_convolution(xb, adjb, wb, bb)
    jax.block_until_ready(outb)
    refb = adjb @ (xb @ wb) + bb
    assert outb.shape == (1200, 96) and outb.dtype == xb.dtype
    assert jnp.allclose(outb, refb, atol=2e-2, rtol=2e-2), \
        float(jnp.max(jnp.abs(outb - refb)))

    print("KERNEL_OK")
</pallas_src>

<mosaic_0001>
module attributes {stable_mosaic.version = 11 : i64} {
  func.func @kernel(%arg0: i32, %arg1: memref<128x128xf32, #tpu.memory_space<vmem>>, %arg2: memref<128x128xf32, #tpu.memory_space<vmem>>, %arg3: memref<128x128xf32, #tpu.memory_space<vmem>>, %arg4: memref<1x128xf32, #tpu.memory_space<vmem>>, %arg5: memref<128x128xf32, #tpu.memory_space<vmem>>) attributes {dimension_semantics = [#tpu.dimension_semantics<arbitrary>], iteration_bounds = array<i64: 1>, scalar_prefetch = 0 : i64, scratch_operands = 0 : i64, tpu.core_type = #tpu.core_type<tc>, window_params = [{pipeline_mode = #tpu.pipeline_mode<synchronous>, transform_indices = @transform_0, window_bounds = array<i64: 128, 128>}, {pipeline_mode = #tpu.pipeline_mode<synchronous>, transform_indices = @transform_1, window_bounds = array<i64: 128, 128>}, {pipeline_mode = #tpu.pipeline_mode<synchronous>, transform_indices = @transform_2, window_bounds = array<i64: 128, 128>}, {pipeline_mode = #tpu.pipeline_mode<synchronous>, transform_indices = @transform_3, window_bounds = array<i64: 1, 128>}, {pipeline_mode = #tpu.pipeline_mode<synchronous>, transform_indices = @transform_4, window_bounds = array<i64: 128, 128>}]} {
    %c0 = arith.constant 0 : index
    %c0_0 = arith.constant 0 : index
    %0 = vector.load %arg1[%c0, %c0_0] : memref<128x128xf32, #tpu.memory_space<vmem>>, vector<128x128xf32>
    %c0_1 = arith.constant 0 : index
    %c0_2 = arith.constant 0 : index
    %1 = vector.load %arg2[%c0_1, %c0_2] : memref<128x128xf32, #tpu.memory_space<vmem>>, vector<128x128xf32>
    %cst = arith.constant dense<0.000000e+00> : vector<128x128xf32>
    %2 = tpu.matmul %0, %1, %cst {dimension_numbers = #tpu.dot_dimension_numbers<[1], [0], [0], [1], [0, 0, 1, 1], [], []>} : vector<128x128xf32>, vector<128x128xf32>, vector<128x128xf32> -> vector<128x128xf32>
    %c0_3 = arith.constant 0 : index
    %c0_4 = arith.constant 0 : index
    %3 = vector.load %arg3[%c0_3, %c0_4] : memref<128x128xf32, #tpu.memory_space<vmem>>, vector<128x128xf32>
    %cst_5 = arith.constant dense<0.000000e+00> : vector<128x128xf32>
    %4 = tpu.matmul %3, %2, %cst_5 {dimension_numbers = #tpu.dot_dimension_numbers<[1], [0], [0], [1], [0, 0, 1, 1], [], []>} : vector<128x128xf32>, vector<128x128xf32>, vector<128x128xf32> -> vector<128x128xf32>
    %c0_6 = arith.constant 0 : index
    %c0_7 = arith.constant 0 : index
    %5 = vector.load %arg4[%c0_6, %c0_7] : memref<1x128xf32, #tpu.memory_space<vmem>>, vector<1x128xf32>
    %6 = vector.broadcast %5 : vector<1x128xf32> to vector<128x128xf32>
    %7 = arith.addf %4, %6 : vector<128x128xf32>
    %c0_8 = arith.constant 0 : index
    %c0_9 = arith.constant 0 : index
    %8 = vector.load %arg5[%c0_8, %c0_9] : memref<128x128xf32, #tpu.memory_space<vmem>>, vector<128x128xf32>
    tpu.vector_store %arg5[%c0_8, %c0_9], %7 {strides = array<i32>} : memref<128x128xf32, #tpu.memory_space<vmem>>, vector<128x128xf32>,
    return
  }
  func.func @transform_0(%arg0: i32) -> (i32, i32) {
    %c0_i32 = arith.constant 0 : i32
    %c0_i32_0 = arith.constant 0 : i32
    %c0_i32_1 = arith.constant 0 : i32
    return %c0_i32, %c0_i32_0 : i32, i32
  }
  func.func @transform_1(%arg0: i32) -> (i32, i32) {
    %c0_i32 = arith.constant 0 : i32
    %c0_i32_0 = arith.constant 0 : i32
    %c0_i32_1 = arith.constant 0 : i32
    return %c0_i32, %c0_i32_0 : i32, i32
  }
  func.func @transform_2(%arg0: i32) -> (i32, i32) {
    %c0_i32 = arith.constant 0 : i32
    %c0_i32_0 = arith.constant 0 : i32
    %c0_i32_1 = arith.constant 0 : i32
    return %c0_i32, %c0_i32_0 : i32, i32
  }
  func.func @transform_3(%arg0: i32) -> (i32, i32) {
    %c0_i32 = arith.constant 0 : i32
    %c0_i32_0 = arith.constant 0 : i32
    %c0_i32_1 = arith.constant 0 : i32
    return %c0_i32, %c0_i32_0 : i32, i32
  }
  func.func @transform_4(%arg0: i32) -> (i32, i32) {
    %c0_i32 = arith.constant 0 : i32
    %c0_i32_0 = arith.constant 0 : i32
    %c0_i32_1 = arith.constant 0 : i32
    return %c0_i32, %c0_i32_0 : i32, i32
  }
}

</mosaic_0001>

<bundles_post_ra>
// kernel: tpu_custom_call.1
= control target key start
LH: loop header
LB: loop body
LE: loop exit
PB: predicated region body
PF: predicated region fallthrough
CT: control target
= control target key end

     0   :  { %9 = vsyncpa [#allocation3], 0  ;;  %s482_s0 = inlined_call_operand.hbm [shape: f32[128,128], index: 0, kind: input, shape index: {}]   ;;  %s483_s1 = inlined_call_operand.hbm [shape: f32[128,128], index: 1, kind: input, shape index: {}]   ;;  %s484_s2 = inlined_call_operand.hbm [shape: f32[128,128], index: 2, kind: input, shape index: {}]   ;;  %s485_s3 = inlined_call_operand.vmem [shape: f32[1,128], index: 3, kind: input, shape index: {}]   ;;  %s486_s4 = inlined_call_operand.hbm [shape: f32[128,128], index: 4, kind: output, shape index: {}]  }
   0x1   :  { %10 = vsyncpa [#allocation6], 0 }
   0x2   :  { %11 = vsyncpa [#allocation4], 0  ;;  %s29_s17 = sshll.u32 %s483_s1, 4  ;;  %s424_s18 = smov [#allocation5]   ;;  %s30_s17 = int_to_ptr.hbm [resolvable:$true] %s29_s17 }
   0x3   :  { %s31_s19 = sshll.u32 %s424_s18, 4  ;;  %s16_s22 = sshll.u32 %s482_s0, 4  ;;  %s32_s19 = int_to_ptr.vmem [resolvable:$true] %s31_s19  ;;  %s17_s22 = int_to_ptr.hbm [resolvable:$true] %s16_s22 }
   0x4   :  { %s425_s23 = smov 128   ;;  %s426_s24 = smov 8  }
   0x5   :  { %37 = dma.hbm_to_vmem [thread:$0]  %s30_s17, 2048, %s32_s19, [#allocation6], %s425_s23, %s425_s23, %s426_s24  }
   0x6   :  { %s427_s25 = smov [#allocation2]   ;;  %s42_s1 = sshll.u32 %s484_s2, 4  ;;  %s43_s1 = int_to_ptr.hbm [resolvable:$true] %s42_s1 }
   0x7   :  { %s18_s26 = sshll.u32 %s427_s25, 4  ;;  %s428_s0 = smov [#allocation7]   ;;  %s19_s26 = int_to_ptr.vmem [resolvable:$true] %s18_s26 }
   0x8   :  { %24 = dma.hbm_to_vmem [thread:$0]  %s17_s22, 2048, %s19_s26, [#allocation3], %s425_s23, %s425_s23, %s426_s24  }
   0x9   :  { %s44_s29 = sshll.u32 %s428_s0, 4  ;;  %s45_s29 = int_to_ptr.vmem [resolvable:$true] %s44_s29 }
   0xa   :  { %50 = dma.hbm_to_vmem [thread:$0]  %s43_s1, 2048, %s45_s29, [#allocation6], %s425_s23, %s425_s23, %s426_s24  }
   0xb   :  { %418 = dma.done.wait [#allocation3], 2048  }
   0xc   :  { %419 = vsyncadd [#allocation3], 4294965248 }
   0xd   :  { %420 = dma.done.wait [#allocation6], 4096  }
   0xe   :  { %421 = vsyncadd [#allocation6], 4294963200  ;;  %v96_v0 = vld [vmem:[#allocation5 + $0x78] sm:$0xff]  ;;  %v95_v1 = vld [vmem:[#allocation5 + $0x70] sm:$0xff]  ;;  %s269_s8 = sshll.u32 %s486_s4, 4  ;;  %s270_s8 = int_to_ptr.hbm [resolvable:$true] %s269_s8 }
   0xf   :  { %283 = vmatpush.msra.mxu2 %v96_v0  ;;  %97 = vmatpush.msra.mxu0 %v96_v0  ;;  %v94_v2 = vld [vmem:[#allocation5 + $0x68] sm:$0xff]  ;;  %v93_v3 = vld [vmem:[#allocation5 + $0x60] sm:$0xff]  ;;  %v92_v4 = vld [vmem:[#allocation5 + $0x58] sm:$0xff] }
  0x10   :  { %v91_v5 = vld [vmem:[#allocation5 + $0x50] sm:$0xff]  ;;  %v90_v6 = vld [vmem:[#allocation5 + $0x48] sm:$0xff]  ;;  %v89_v7 = vld [vmem:[#allocation5 + $0x40] sm:$0xff] }
  0x11   :  { %284 = vmatpush.msra.mxu2 %v95_v1  ;;  %98 = vmatpush.msra.mxu0 %v95_v1  ;;  %v88_v8 = vld [vmem:[#allocation5 + $0x38] sm:$0xff]  ;;  %v87_v9 = vld [vmem:[#allocation5 + $0x30] sm:$0xff]  ;;  %v86_v10 = vld [vmem:[#allocation5 + $0x28] sm:$0xff] }
  0x12   :  { %v85_v11 = vld [vmem:[#allocation5 + $0x20] sm:$0xff]  ;;  %v84_v12 = vld [vmem:[#allocation5 + $0x18] sm:$0xff]  ;;  %v83_v13 = vld [vmem:[#allocation5 + $0x10] sm:$0xff] }
  0x13   :  { %285 = vmatpush.msra.mxu2 %v94_v2  ;;  %99 = vmatpush.msra.mxu0 %v94_v2  ;;  %v82_v14 = vld [vmem:[#allocation5 + $0x8] sm:$0xff]  ;;  %v81_v15 = vld [vmem:[#allocation5] sm:$0xff]  ;;  %v75_v20 = vld [vmem:[#allocation2 + $0x50] sm:$0xff] }
  0x14   :  { %v73_v16 = vld [vmem:[#allocation2 + $0x40] sm:$0xff]  ;;  %v74_v18 = vld [vmem:[#allocation2 + $0x48] sm:$0xff]  ;;  %v67_v21 = vld [vmem:[#allocation2 + $0x10] sm:$0xff] }
  0x15   :  { %286 = vmatpush.msra.mxu2 %v93_v3  ;;  %100 = vmatpush.msra.mxu0 %v93_v3  ;;  %v65_v17 = vld [vmem:[#allocation2] sm:$0xff]  ;;  %v66_v19 = vld [vmem:[#allocation2 + $0x8] sm:$0xff]  ;;  %v76_v22 = vld [vmem:[#allocation2 + $0x58] sm:$0xff] }
  0x16   :  { %v68_v23 = vld [vmem:[#allocation2 + $0x18] sm:$0xff]  ;;  %v77_v24 = vld [vmem:[#allocation2 + $0x60] sm:$0xff]  ;;  %v78_v26 = vld [vmem:[#allocation2 + $0x68] sm:$0xff] }
  0x17   :  { %287 = vmatpush.msra.mxu2 %v92_v4  ;;  %101 = vmatpush.msra.mxu0 %v92_v4  ;;  %v69_v25 = vld [vmem:[#allocation2 + $0x20] sm:$0xff]  ;;  %v70_v27 = vld [vmem:[#allocation2 + $0x28] sm:$0xff]  ;;  %v79_v28 = vld [vmem:[#allocation2 + $0x70] sm:$0xff] }
  0x18   :  { %v71_v29 = vld [vmem:[#allocation2 + $0x30] sm:$0xff]  ;;  %v80_v30 = vld [vmem:[#allocation2 + $0x78] sm:$0xff]  ;;  %v170_v48 = vld [vmem:[#allocation7 + $0x40] sm:$0xff] }
  0x19   :  { %288 = vmatpush.msra.mxu2 %v91_v5  ;;  %102 = vmatpush.msra.mxu0 %v91_v5  ;;  %v72_v31 = vld [vmem:[#allocation2 + $0x38] sm:$0xff]  ;;  %v162_v49 = vld [vmem:[#allocation7] sm:$0xff]  ;;  %v171_v50 = vld [vmem:[#allocation7 + $0x48] sm:$0xff] }
  0x1a   :  { %v163_v51 = vld [vmem:[#allocation7 + $0x8] sm:$0xff]  ;;  %v172_v52 = vld [vmem:[#allocation7 + $0x50] sm:$0xff]  ;;  %v173_v54 = vld [vmem:[#allocation7 + $0x58] sm:$0xff] }
  0x1b   :  { %289 = vmatpush.msra.mxu2 %v90_v6  ;;  %103 = vmatpush.msra.mxu0 %v90_v6  ;;  %v164_v53 = vld [vmem:[#allocation7 + $0x10] sm:$0xff]  ;;  %v165_v55 = vld [vmem:[#allocation7 + $0x18] sm:$0xff]  ;;  %v174_v56 = vld [vmem:[#allocation7 + $0x60] sm:$0xff] }
  0x1c   :  { %v166_v57 = vld [vmem:[#allocation7 + $0x20] sm:$0xff]  ;;  %v175_v58 = vld [vmem:[#allocation7 + $0x68] sm:$0xff]  ;;  %v176_v60 = vld [vmem:[#allocation7 + $0x70] sm:$0xff] }
  0x1d   :  { %290 = vmatpush.msra.mxu2 %v89_v7  ;;  %104 = vmatpush.msra.mxu0 %v89_v7  ;;  %v167_v59 = vld [vmem:[#allocation7 + $0x28] sm:$0xff]  ;;  %v168_v61 = vld [vmem:[#allocation7 + $0x30] sm:$0xff]  ;;  %v177_v62 = vld [vmem:[#allocation7 + $0x78] sm:$0xff] }
  0x1e   :  { %v169_v63 = vld [vmem:[#allocation7 + $0x38] sm:$0xff]  ;;  %v321_v0 = vld [vmem:[%s485_s3] ss:$0 sm:$0xff]  ;;  %s429_s3 = smov [#allocation8]  }
  0x1f   :  { %291 = vmatpush.msra.mxu2 %v88_v8  ;;  %105 = vmatpush.msra.mxu0 %v88_v8  ;;  %s267_s5 = sshll.u32 %s429_s3, 4  ;;  %s268_s5 = int_to_ptr.vmem [resolvable:$true] %s267_s5 }
  0x21   :  { %292 = vmatpush.msra.mxu2 %v87_v9  ;;  %106 = vmatpush.msra.mxu0 %v87_v9 }
  0x23   :  { %293 = vmatpush.msra.mxu2 %v86_v10  ;;  %107 = vmatpush.msra.mxu0 %v86_v10 }
  0x25   :  { %294 = vmatpush.msra.mxu2 %v85_v11  ;;  %108 = vmatpush.msra.mxu0 %v85_v11 }
  0x27   :  { %295 = vmatpush.msra.mxu2 %v84_v12  ;;  %109 = vmatpush.msra.mxu0 %v84_v12 }
  0x29   :  { %296 = vmatpush.msra.mxu2 %v83_v13  ;;  %110 = vmatpush.msra.mxu0 %v83_v13 }
  0x2b   :  { %297 = vmatpush.msra.mxu2 %v82_v14  ;;  %111 = vmatpush.msra.mxu0 %v82_v14 }
  0x2d   :  { %298 = vmatpush.msra.mxu2 %v81_v15  ;;  %112 = vmatpush.msra.mxu0 %v81_v15 }
  0x2e   :  { %137 = vmatmul.f32.vlgmr.msra.gmra.mxu2 %v73_v16  ;;  %113 = vmatmul.f32.vlgmr.msra.gmra.mxu0 %v65_v17 }
  0x36   :  { %140 = vmatmul.f32.gmra.mxu2 %v74_v18  ;;  %116 = vmatmul.f32.gmra.mxu0 %v66_v19 }
  0x3e   :  { %143 = vmatmul.f32.gmra.mxu2 %v75_v20  ;;  %119 = vmatmul.f32.gmra.mxu0 %v67_v21 }
  0x46   :  { %146 = vmatmul.f32.gmra.mxu2 %v76_v22  ;;  %122 = vmatmul.f32.gmra.mxu0 %v68_v23 }
  0x4e   :  { %149 = vmatmul.f32.gmra.mxu2 %v77_v24  ;;  %125 = vmatmul.f32.gmra.mxu0 %v69_v25 }
  0x56   :  { %152 = vmatmul.f32.gmra.mxu2 %v78_v26  ;;  %128 = vmatmul.f32.gmra.mxu0 %v70_v27 }
  0x5e   :  { %155 = vmatmul.f32.gmra.mxu2 %v79_v28  ;;  %131 = vmatmul.f32.gmra.mxu0 %v71_v29 }
  0x66   :  { %158 = vmatmul.f32.gmra.mxu2 %v80_v30  ;;  %134 = vmatmul.f32.gmra.mxu0 %v72_v31 }
  0xab   :  { %v114_v33 = vpop.f32.mrf.mxu0 }
  0xb1   :  { %v138_v32 = vpop.f32.mrf.mxu2 }
  0xb3   :  { %v117_v35 = vpop.f32.mrf.mxu0 }
  0xb9   :  { %v141_v34 = vpop.f32.mrf.mxu2 }
  0xbb   :  { %v120_v37 = vpop.f32.mrf.mxu0 }
  0xc1   :  { %v144_v36 = vpop.f32.mrf.mxu2 }
  0xc3   :  { %v123_v39 = vpop.f32.mrf.mxu0 }
  0xc9   :  { %v147_v38 = vpop.f32.mrf.mxu2 }
  0xcb   :  { %v126_v42 = vpop.f32.mrf.mxu0 }
  0xd1   :  { %v150_v40 = vpop.f32.mrf.mxu2 }
  0xd3   :  { %v129_v44 = vpop.f32.mrf.mxu0 }
  0xd9   :  { %v153_v41 = vpop.f32.mrf.mxu2 }
  0xdb   :  { %v132_v46 = vpop.f32.mrf.mxu0 }
  0xe1   :  { %v156_v43 = vpop.f32.mrf.mxu2 }
  0xe3   :  { %v135_v47 = vpop.f32.mrf.mxu0 }
  0xe9   :  { %v159_v45 = vpop.f32.mrf.mxu2 }
  0xea   :  { %182 = vmatpush.msra.mxu1 %v159_v45  ;;  %299 = vmatpush.msra.mxu3 %v159_v45 }
  0xec   :  { %183 = vmatpush.msra.mxu1 %v156_v43  ;;  %300 = vmatpush.msra.mxu3 %v156_v43 }
  0xee   :  { %184 = vmatpush.msra.mxu1 %v153_v41  ;;  %301 = vmatpush.msra.mxu3 %v153_v41 }
  0xf0   :  { %185 = vmatpush.msra.mxu1 %v150_v40  ;;  %302 = vmatpush.msra.mxu3 %v150_v40 }
  0xf2   :  { %186 = vmatpush.msra.mxu1 %v147_v38  ;;  %303 = vmatpush.msra.mxu3 %v147_v38 }
  0xf4   :  { %187 = vmatpush.msra.mxu1 %v144_v36  ;;  %304 = vmatpush.msra.mxu3 %v144_v36 }
  0xf6   :  { %188 = vmatpush.msra.mxu1 %v141_v34  ;;  %305 = vmatpush.msra.mxu3 %v141_v34 }
  0xf8   :  { %189 = vmatpush.msra.mxu1 %v138_v32  ;;  %306 = vmatpush.msra.mxu3 %v138_v32 }
  0xfa   :  { %190 = vmatpush.msra.mxu1 %v135_v47  ;;  %307 = vmatpush.msra.mxu3 %v135_v47 }
  0xfc   :  { %191 = vmatpush.msra.mxu1 %v132_v46  ;;  %308 = vmatpush.msra.mxu3 %v132_v46 }
  0xfe   :  { %192 = vmatpush.msra.mxu1 %v129_v44  ;;  %309 = vmatpush.msra.mxu3 %v129_v44 }
 0x100   :  { %193 = vmatpush.msra.mxu1 %v126_v42  ;;  %310 = vmatpush.msra.mxu3 %v126_v42 }
 0x102   :  { %194 = vmatpush.msra.mxu1 %v123_v39  ;;  %311 = vmatpush.msra.mxu3 %v123_v39 }
 0x104   :  { %195 = vmatpush.msra.mxu1 %v120_v37  ;;  %312 = vmatpush.msra.mxu3 %v120_v37 }
 0x106   :  { %196 = vmatpush.msra.mxu1 %v117_v35  ;;  %313 = vmatpush.msra.mxu3 %v117_v35 }
 0x108   :  { %197 = vmatpush.msra.mxu1 %v114_v33  ;;  %314 = vmatpush.msra.mxu3 %v114_v33 }
 0x109   :  { %222 = vmatmul.f32.vlgmr.msra.gmra.mxu3 %v170_v48  ;;  %198 = vmatmul.f32.vlgmr.msra.gmra.mxu1 %v162_v49 }
 0x111   :  { %225 = vmatmul.f32.gmra.mxu3 %v171_v50  ;;  %201 = vmatmul.f32.gmra.mxu1 %v163_v51 }
 0x119   :  { %228 = vmatmul.f32.gmra.mxu3 %v172_v52  ;;  %204 = vmatmul.f32.gmra.mxu1 %v164_v53 }
 0x121   :  { %231 = vmatmul.f32.gmra.mxu3 %v173_v54  ;;  %207 = vmatmul.f32.gmra.mxu1 %v165_v55 }
 0x129   :  { %234 = vmatmul.f32.gmra.mxu3 %v174_v56  ;;  %210 = vmatmul.f32.gmra.mxu1 %v166_v57 }
 0x131   :  { %237 = vmatmul.f32.gmra.mxu3 %v175_v58  ;;  %213 = vmatmul.f32.gmra.mxu1 %v167_v59 }
 0x139   :  { %240 = vmatmul.f32.gmra.mxu3 %v176_v60  ;;  %216 = vmatmul.f32.gmra.mxu1 %v168_v61 }
 0x141   :  { %243 = vmatmul.f32.gmra.mxu3 %v177_v62  ;;  %219 = vmatmul.f32.gmra.mxu1 %v169_v63 }
 0x186   :  { %v199_v1 = vpop.f32.mrf.mxu1 }
 0x187   :  { %v200_v2 = vadd.f32 %v321_v0, %v199_v1 }
 0x189   :  { %247 = vst [vmem:[#allocation8] sm:$0xff] %v200_v2 }
 0x18c   :  { %v223_v3 = vpop.f32.mrf.mxu3 }
 0x18d   :  { %v224_v4 = vadd.f32 %v321_v0, %v223_v3 }
 0x18e   :  { %v202_v5 = vpop.f32.mrf.mxu1 }
 0x18f   :  { %255 = vst [vmem:[#allocation8 + $0x40] sm:$0xff] %v224_v4  ;;  %v203_v6 = vadd.f32 %v321_v0, %v202_v5 }
 0x191   :  { %248 = vst [vmem:[#allocation8 + $0x8] sm:$0xff] %v203_v6 }
 0x194   :  { %v226_v7 = vpop.f32.mrf.mxu3 }
 0x195   :  { %v227_v8 = vadd.f32 %v321_v0, %v226_v7 }
 0x196   :  { %v205_v9 = vpop.f32.mrf.mxu1 }
 0x197   :  { %256 = vst [vmem:[#allocation8 + $0x48] sm:$0xff] %v227_v8  ;;  %v206_v10 = vadd.f32 %v321_v0, %v205_v9 }
 0x199   :  { %249 = vst [vmem:[#allocation8 + $0x10] sm:$0xff] %v206_v10 }
 0x19c   :  { %v229_v11 = vpop.f32.mrf.mxu3 }
 0x19d   :  { %v230_v12 = vadd.f32 %v321_v0, %v229_v11 }
 0x19e   :  { %v208_v13 = vpop.f32.mrf.mxu1 }
 0x19f   :  { %257 = vst [vmem:[#allocation8 + $0x50] sm:$0xff] %v230_v12  ;;  %v209_v14 = vadd.f32 %v321_v0, %v208_v13 }
 0x1a1   :  { %250 = vst [vmem:[#allocation8 + $0x18] sm:$0xff] %v209_v14 }
 0x1a4   :  { %v232_v15 = vpop.f32.mrf.mxu3 }
 0x1a5   :  { %v233_v16 = vadd.f32 %v321_v0, %v232_v15 }
 0x1a6   :  { %v211_v17 = vpop.f32.mrf.mxu1 }
 0x1a7   :  { %258 = vst [vmem:[#allocation8 + $0x58] sm:$0xff] %v233_v16  ;;  %v212_v18 = vadd.f32 %v321_v0, %v211_v17 }
 0x1a9   :  { %251 = vst [vmem:[#allocation8 + $0x20] sm:$0xff] %v212_v18 }
 0x1ac   :  { %v235_v19 = vpop.f32.mrf.mxu3 }
 0x1ad   :  { %v236_v20 = vadd.f32 %v321_v0, %v235_v19 }
 0x1ae   :  { %v214_v21 = vpop.f32.mrf.mxu1 }
 0x1af   :  { %259 = vst [vmem:[#allocation8 + $0x60] sm:$0xff] %v236_v20  ;;  %v215_v22 = vadd.f32 %v321_v0, %v214_v21 }
 0x1b1   :  { %252 = vst [vmem:[#allocation8 + $0x28] sm:$0xff] %v215_v22 }
 0x1b4   :  { %v238_v23 = vpop.f32.mrf.mxu3 }
 0x1b5   :  { %v239_v24 = vadd.f32 %v321_v0, %v238_v23 }
 0x1b6   :  { %v217_v25 = vpop.f32.mrf.mxu1 }
 0x1b7   :  { %260 = vst [vmem:[#allocation8 + $0x68] sm:$0xff] %v239_v24  ;;  %v218_v26 = vadd.f32 %v321_v0, %v217_v25 }
 0x1b9   :  { %253 = vst [vmem:[#allocation8 + $0x30] sm:$0xff] %v218_v26 }
 0x1bc   :  { %v241_v27 = vpop.f32.mrf.mxu3 }
 0x1bd   :  { %v242_v28 = vadd.f32 %v321_v0, %v241_v27 }
 0x1be   :  { %v220_v29 = vpop.f32.mrf.mxu1 }
 0x1bf   :  { %261 = vst [vmem:[#allocation8 + $0x70] sm:$0xff] %v242_v28  ;;  %v221_v30 = vadd.f32 %v321_v0, %v220_v29 }
 0x1c1   :  { %254 = vst [vmem:[#allocation8 + $0x38] sm:$0xff] %v221_v30 }
 0x1c4   :  { %v244_v31 = vpop.f32.mrf.mxu3 }
 0x1c5   :  { %v245_v32 = vadd.f32 %v321_v0, %v244_v31 }
 0x1c7   :  { %262 = vst [vmem:[#allocation8 + $0x78] sm:$0xff] %v245_v32 }
 0x1c8   :  { %275 = dma.vmem_to_hbm [thread:$0]  %s268_s5, 2048, %s270_s8, [#allocation4], %s425_s23, %s425_s23, %s426_s24  }
 0x1c9   :  { %422 = dma.done.wait [#allocation4], 2048  }
 0x1ca   :  { %423 = vsyncadd [#allocation4], 4294965248 }
 0x1cb   :  { %280 = vsyncpa [#allocation3], 1 }
 0x1cc   :  { %281 = vsyncpa [#allocation6], 1 }
 0x1cd   :  { %282 = vsyncpa [#allocation4], 1 }

</bundles_post_ra>
